<compile_context>
chip_gen: v7x
topology: tpu7x:2x2x1
jax: 0.10.0
libtpu: 0.0.40
codegen_flags: <defaults>
</compile_context>

<pallas_src>
import functools

import jax
import jax.numpy as jnp
from jax import lax
from jax.experimental import pallas as pl
from jax.experimental.pallas import tpu as pltpu

LANES = 128
SUBLANES = 8
MAX_TILE_ROWS = 2048      # (2048, 128) f32 block = 1 MiB -> 4 MiB double-buffered
NUM_CORE_SPLITS = 2       # leading "parallel" axis -> both TCs on v7x


def _round_up(x, m):
    return ((x + m - 1) // m) * m


def _l1_kernel(pred_ref, gt_ref, out_ref, *, rows, steps_per_split, needs_mask):
    c = pl.program_id(0)   # "parallel" axis (megacore split on v7x)
    i = pl.program_id(1)   # "arbitrary" sequential reduction axis
    tile_rows = pred_ref.shape[0]

    @pl.when(i == 0)
    def _():
        out_ref[...] = jnp.zeros_like(out_ref)

    p = pred_ref[...].astype(jnp.float32)
    g = gt_ref[...].astype(jnp.float32)
    diff = jnp.abs(p - g)

    if needs_mask:
        # Zero rows past the real row count (partial last block, and any
        # clamped duplicate block on the other core-split).
        block = c * steps_per_split + i
        row_ids = block * tile_rows + lax.broadcasted_iota(
            jnp.int32, (tile_rows, LANES), 0)
        diff = jnp.where(row_ids < rows, diff, 0.0)

    # VPU-only accumulation into the vreg-shaped resident output block:
    # fold sublane groups with cross-vreg adds; no per-step XLU reduce.
    partial = diff.reshape(tile_rows // SUBLANES, SUBLANES, LANES).sum(axis=0)
    out_ref[...] += partial.reshape(1, SUBLANES, LANES)


def l1_loss(pred, gt, weight=1.0):
    assert pred.shape == gt.shape, "pred/gt shape mismatch"
    n_elems = pred.size

    pred_f = pred.reshape(-1)
    gt_f = gt.reshape(-1)

    # Lane-dense 2-D slab. Only pad when n_elems % 128 != 0 (the typical NCHW
    # case needs no copy at all); the padded tail contributes |0 - 0| = 0.
    rem = n_elems % LANES
    if rem:
        pad = LANES - rem
        pred_f = jnp.pad(pred_f, (0, pad))
        gt_f = jnp.pad(gt_f, (0, pad))
    rows = pred_f.size // LANES
    pred_2d = pred_f.reshape(rows, LANES)
    gt_2d = gt_f.reshape(rows, LANES)

    # Tile sizing: as large as possible (amortize ~0.35us/step overhead) while
    # keeping 2 inputs x 2 pipeline buffers well under scoped VMEM on every
    # generation (v5e 16 MiB default scoped, v7x 64 MiB physical VMEM).
    itemsize = jnp.dtype(pred_2d.dtype).itemsize
    sublane_mult = SUBLANES * max(1, 4 // itemsize)   # 8 f32 / 16 bf16 / 32 i8
    tile_rows = min(MAX_TILE_ROWS, _round_up(rows, sublane_mult))

    total_steps = pl.cdiv(rows, tile_rows)
    n_splits = min(NUM_CORE_SPLITS, total_steps)
    steps_per_split = pl.cdiv(total_steps, n_splits)
    covered_rows = n_splits * steps_per_split * tile_rows
    needs_mask = covered_rows != rows

    if n_splits * steps_per_split == total_steps:
        def in_map(c, i):
            return (c * steps_per_split + i, 0)
    else:
        last_block = total_steps - 1

        def in_map(c, i):
            # Clamp so a core-split's trailing step maps to a valid block; its
            # contribution is zeroed by the in-kernel row mask.
            return (jnp.minimum(c * steps_per_split + i, last_block), 0)

    kernel = functools.partial(
        _l1_kernel, rows=rows, steps_per_split=steps_per_split,
        needs_mask=needs_mask)

    bytes_accessed = (pred_2d.size + gt_2d.size) * itemsize \
        + n_splits * SUBLANES * LANES * 4
    cost = pl.CostEstimate(
        flops=3 * n_elems, transcendentals=0, bytes_accessed=bytes_accessed)

    partials = pl.pallas_call(
        kernel,
        out_shape=jax.ShapeDtypeStruct((n_splits, SUBLANES, LANES), jnp.float32),
        grid_spec=pltpu.PrefetchScalarGridSpec(
            num_scalar_prefetch=0,
            grid=(n_splits, steps_per_split),
            in_specs=[
                pl.BlockSpec((tile_rows, LANES), in_map),
                pl.BlockSpec((tile_rows, LANES), in_map),
            ],
            out_specs=pl.BlockSpec((1, SUBLANES, LANES), lambda c, i: (c, 0, 0)),
        ),
        compiler_params=pltpu.CompilerParams(
            dimension_semantics=("parallel", "arbitrary")),
        cost_estimate=cost,
    )(pred_2d, gt_2d)

    # Tiny JAX epilogue: final cross-lane reduce + weight / mean scaling.
    # Keeps `weight` traceable and avoids kernel recompiles when it changes.
    return (weight * jnp.sum(partials)) / n_elems


if __name__ == "__main__":
    root = jax.random.PRNGKey(0)
    cases = [
        ((2, 4, 16, 16), 1.0),   # small NCHW, block == array (no mask path)
        ((4, 8, 96, 96), 0.5),   # multi-block + 2-way core split + masked tail
        ((3, 5, 7, 11), 2.0),    # ragged size (lane pad + masked partial block)
    ]
    for idx, (shape, w) in enumerate(cases):
        k1, k2 = jax.random.split(jax.random.fold_in(root, idx))
        pred = jax.random.normal(k1, shape, dtype=jnp.float32)
        gt = jax.random.normal(k2, shape, dtype=jnp.float32)

        loss = jax.block_until_ready(l1_loss(pred, gt, weight=w))

        ref = w * jnp.mean(jnp.abs(pred - gt))
        assert jnp.allclose(loss, ref, rtol=1e-5, atol=1e-6), (shape, loss, ref)

    print("KERNEL_OK")
</pallas_src>

<mosaic_0001>
module attributes {stable_mosaic.version = 11 : i64} {
  func.func @_l1_kernel(%arg0: i32, %arg1: i32, %arg2: memref<16x128xf32, #tpu.memory_space<vmem>>, %arg3: memref<16x128xf32, #tpu.memory_space<vmem>>, %arg4: memref<1x8x128xf32, #tpu.memory_space<vmem>>) attributes {dimension_semantics = [#tpu.dimension_semantics<parallel>, #tpu.dimension_semantics<arbitrary>], iteration_bounds = array<i64: 1, 1>, scalar_prefetch = 0 : i64, scratch_operands = 0 : i64, tpu.core_type = #tpu.core_type<tc>, window_params = [{transform_indices = @transform_0, window_bounds = array<i64: 16, 128>}, {transform_indices = @transform_1, window_bounds = array<i64: 16, 128>}, {transform_indices = @transform_2, window_bounds = array<i64: 1, 8, 128>}]} {
    %c0_i32 = arith.constant 0 : i32
    %0 = arith.cmpi eq, %arg1, %c0_i32 : i32
    %1 = arith.extui %0 : i1 to i32
    %c0_i32_0 = arith.constant 0 : i32
    %2 = arith.cmpi ne, %1, %c0_i32_0 : i32
    scf.if %2 {
      %cst_10 = arith.constant 0.000000e+00 : f32
      %13 = vector.broadcast %cst_10 : f32 to vector<1x8x128xf32>
      %c0_11 = arith.constant 0 : index
      %c0_12 = arith.constant 0 : index
      %c0_13 = arith.constant 0 : index
      %14 = vector.load %arg4[%c0_11, %c0_12, %c0_13] : memref<1x8x128xf32, #tpu.memory_space<vmem>>, vector<1x8x128xf32>
      tpu.vector_store %arg4[%c0_11, %c0_12, %c0_13], %13 {strides = array<i32>} : memref<1x8x128xf32, #tpu.memory_space<vmem>>, vector<1x8x128xf32>,
    } else {
    }
    %c0 = arith.constant 0 : index
    %c0_1 = arith.constant 0 : index
    %3 = vector.load %arg2[%c0, %c0_1] : memref<16x128xf32, #tpu.memory_space<vmem>>, vector<16x128xf32>
    %c0_2 = arith.constant 0 : index
    %c0_3 = arith.constant 0 : index
    %4 = vector.load %arg3[%c0_2, %c0_3] : memref<16x128xf32, #tpu.memory_space<vmem>>, vector<16x128xf32>
    %5 = arith.subf %3, %4 : vector<16x128xf32>
    %6 = math.absf %5 : vector<16x128xf32>
    %7 = vector.shape_cast %6 : vector<16x128xf32> to vector<2x8x128xf32>
    %cst = arith.constant dense<0.000000e+00> : vector<8x128xf32>
    %8 = vector.multi_reduction <add>, %7, %cst [0] : vector<2x8x128xf32> to vector<8x128xf32>
    %c0_4 = arith.constant 0 : index
    %c0_5 = arith.constant 0 : index
    %c0_6 = arith.constant 0 : index
    %9 = vector.load %arg4[%c0_4, %c0_5, %c0_6] : memref<1x8x128xf32, #tpu.memory_space<vmem>>, vector<1x8x128xf32>
    %10 = vector.shape_cast %8 : vector<8x128xf32> to vector<1x8x128xf32>
    %11 = arith.addf %9, %10 : vector<1x8x128xf32>
    %c0_7 = arith.constant 0 : index
    %c0_8 = arith.constant 0 : index
    %c0_9 = arith.constant 0 : index
    %12 = vector.load %arg4[%c0_7, %c0_8, %c0_9] : memref<1x8x128xf32, #tpu.memory_space<vmem>>, vector<1x8x128xf32>
    tpu.vector_store %arg4[%c0_7, %c0_8, %c0_9], %11 {strides = array<i32>} : memref<1x8x128xf32, #tpu.memory_space<vmem>>, vector<1x8x128xf32>,
    return
  }
  func.func @transform_0(%arg0: i32, %arg1: i32) -> (i32, i32) {
    %c1_i32 = arith.constant 1 : i32
    %0 = arith.muli %arg0, %c1_i32 : i32
    %1 = arith.addi %0, %arg1 : i32
    %c0_i32 = arith.constant 0 : i32
    %c0_i32_0 = arith.constant 0 : i32
    return %1, %c0_i32 : i32, i32
  }
  func.func @transform_1(%arg0: i32, %arg1: i32) -> (i32, i32) {
    %c1_i32 = arith.constant 1 : i32
    %0 = arith.muli %arg0, %c1_i32 : i32
    %1 = arith.addi %0, %arg1 : i32
    %c0_i32 = arith.constant 0 : i32
    %c0_i32_0 = arith.constant 0 : i32
    return %1, %c0_i32 : i32, i32
  }
  func.func @transform_2(%arg0: i32, %arg1: i32) -> (i32, i32, i32) {
    %c0_i32 = arith.constant 0 : i32
    %c0_i32_0 = arith.constant 0 : i32
    %c0_i32_1 = arith.constant 0 : i32
    return %arg0, %c0_i32, %c0_i32_0 : i32, i32, i32
  }
}

</mosaic_0001>

<bundles_post_ra>
// kernel: tpu_custom_call.1
= control target key start
LH: loop header
LB: loop body
LE: loop exit
PB: predicated region body
PF: predicated region fallthrough
CT: control target
= control target key end

     0   :  { %7 = vsyncpa [#allocation3], 0  ;;  %s219_s0 = inlined_call_operand.hbm [shape: f32[16,128], index: 0, kind: input, shape index: {}]   ;;  %s220_s1 = inlined_call_operand.hbm [shape: f32[16,128], index: 1, kind: input, shape index: {}]   ;;  %s221_s2 = inlined_call_operand.hbm [shape: f32[1,8,128], index: 2, kind: output, shape index: {}]  }
   0x1   :  { %8 = vsyncpa [#allocation6], 0 }
   0x2   :  { %9 = vsyncpa [#allocation4], 0  ;;  %s163_s9 = smov [#allocation2]   ;;  %s91_s13 = scalar_lea.hbm %s219_s0, 256 }
   0x3   :  { %s19_s10 = sshll.u32 %s163_s9, 4  ;;  %p92_p0 = scmp.ne.s32.totalorder %s219_s0, %s91_s13  ;;  %s20_s10 = int_to_ptr.vmem [resolvable:$true] %s19_s10 }
   0x4   :  { %p95_p1 = scmp.lt.u32.totalorder %s91_s13, %s219_s0 }
   0x6   :  { %p97_p2 = pnand %p95_p1, %p92_p0 }
   0x8   :  { %100 = shalt.err (!%p97_p2)
}
   0x9   :  { %s101_s18 = scalar_lea.vmem %s20_s10, 256  ;;  %p106_p4 = scmp.lt.s32.totalorder %s20_s10, %s20_s10 }
   0xa   :  { %p102_p3 = scmp.ne.s32.totalorder %s20_s10, %s101_s18  ;;  %p107_p5 = scmp.lt.s32.totalorder %s101_s18, %s101_s18 }
   0xc   :  { %p108_p6 = por %p107_p5, %p106_p4 }
   0xe   :  { %p109_p7 = pnand %p108_p6, %p102_p3 }
  0x10   :  { %112 = shalt.err (!%p109_p7)
}
  0x11   :  { %s164_s19 = smov 128   ;;  %s165_s20 = smov 8  }
  0x12   :  { %25 = dma.hbm_to_vmem [thread:$0]  %s219_s0, 256, %s20_s10, [#allocation3], %s164_s19, %s164_s19, %s165_s20  }
  0x13   :  { %s166_s23 = smov [#allocation5]   ;;  %s113_s27 = scalar_lea.hbm %s220_s1, 256 }
  0x14   :  { %s35_s24 = sshll.u32 %s166_s23, 4  ;;  %p114_p8 = scmp.ne.s32.totalorder %s220_s1, %s113_s27  ;;  %s36_s24 = int_to_ptr.vmem [resolvable:$true] %s35_s24 }
  0x15   :  { %p117_p9 = scmp.lt.u32.totalorder %s113_s27, %s220_s1 }
  0x17   :  { %p119_p10 = pnand %p117_p9, %p114_p8 }
  0x19   :  { %122 = shalt.err (!%p119_p10)
}
  0x1a   :  { %s123_s4 = scalar_lea.vmem %s36_s24, 256  ;;  %p128_p12 = scmp.lt.s32.totalorder %s36_s24, %s36_s24 }
  0x1b   :  { %p124_p11 = scmp.ne.s32.totalorder %s36_s24, %s123_s4  ;;  %p129_p13 = scmp.lt.s32.totalorder %s123_s4, %s123_s4 }
  0x1d   :  { %p130_p0 = por %p129_p13, %p128_p12 }
  0x1f   :  { %p131_p1 = pnand %p130_p0, %p124_p11 }
  0x21   :  { %134 = shalt.err (!%p131_p1)
}
  0x22   :  { %41 = dma.hbm_to_vmem [thread:$0]  %s220_s1, 256, %s36_s24, [#allocation6], %s164_s19, %s164_s19, %s165_s20  }
  0x23   :  { %157 = dma.done.wait [#allocation3], 256  }
  0x24   :  { %158 = vsyncadd [#allocation3], 4294967040 }
  0x25   :  { %159 = dma.done.wait [#allocation6], 256  }
  0x26   :  { %160 = vsyncadd [#allocation6], 4294967040  ;;  %v57_v0 = vld [vmem:[#allocation2] sm:$0xff]  ;;  %v58_v1 = vld [vmem:[#allocation2 + $0x8] sm:$0xff]  ;;  %s167_s6 = smov [#allocation7]  }
  0x27   :  { %v59_v2 = vld [vmem:[#allocation5] sm:$0xff]  ;;  %v60_v3 = vld [vmem:[#allocation5 + $0x8] sm:$0xff]  ;;  %s75_s7 = sshll.u32 %s167_s6, 4  ;;  %s76_s7 = int_to_ptr.vmem [resolvable:$true] %s75_s7 }
  0x28   :  { %v61_v4 = vsub.f32 %v57_v0, %v59_v2  ;;  %v62_v5 = vsub.f32 %v58_v1, %v60_v3  ;;  %s135_s8 = scalar_lea.vmem %s76_s7, 128  ;;  %p140_p3 = scmp.lt.s32.totalorder %s76_s7, %s76_s7 }
  0x29   :  { %p136_p2 = scmp.ne.s32.totalorder %s76_s7, %s135_s8  ;;  %p141_p4 = scmp.lt.s32.totalorder %s135_s8, %s135_s8 }
  0x2a   :  { %v63_v6 = vand.u32 2147483647, %v61_v4  ;;  %v64_v7 = vand.u32 2147483647, %v62_v5 }
  0x2b   :  { %p142_p5 = por %p141_p4, %p140_p3 }
  0x2c   :  { %v65_v8 = vadd.f32 %v64_v7, %v63_v6 }
  0x2d   :  { %p143_p6 = pnand %p142_p5, %p136_p2 }
  0x2e   :  { %68 = vst [vmem:[#allocation7] sm:$0xff] %v65_v8 }
  0x2f   :  { %146 = shalt.err (!%p143_p6)
}
  0x30   :  { %s147_s10 = scalar_lea.hbm %s221_s2, 128 }
  0x31   :  { %p148_p7 = scmp.ne.s32.totalorder %s221_s2, %s147_s10  ;;  %p151_p8 = scmp.lt.u32.totalorder %s147_s10, %s221_s2 }
  0x33   :  { %p153_p9 = pnand %p151_p8, %p148_p7 }
  0x35   :  { %156 = shalt.err (!%p153_p9)
}
  0x36   :  { %78 = dma.vmem_to_hbm [thread:$0]  %s76_s7, 128, %s221_s2, [#allocation4]  }
  0x37   :  { %161 = dma.done.wait [#allocation4], 128  }
  0x38   :  { %162 = vsyncadd [#allocation4], 4294967168 }
  0x39   :  { %82 = vsyncpa [#allocation3], 1 }
  0x3a   :  { %83 = vsyncpa [#allocation6], 1 }
  0x3b   :  { %84 = vsyncpa [#allocation4], 1 }

</bundles_post_ra>
